<compile_context>
chip_gen: v7x
topology: tpu7x:2x2x1
jax: 0.10.0
libtpu: 0.0.40
codegen_flags: <defaults>
</compile_context>

<pallas_src>
import jax
import jax.numpy as jnp
from jax.experimental import pallas as pl
from jax.experimental.pallas import tpu as pltpu


def _iip_kernel(pgn_ref, out_ref):
    # pgn_ref: (1, N*D) flattened parameter (same VMEM-resident tile every step)
    # out_ref: (TB, N*D) lane-dense slab of the flattened (B, N*D) output
    row = pgn_ref[...].astype(out_ref.dtype)          # one cast per step
    out_ref[...] = jnp.broadcast_to(row, out_ref.shape)


def iip_forward(images, pgn_vectors):
    """Pallas equivalent of IIP.forward.

    images:      (B, C, H, W) array — only its leading dim and dtype matter.
    pgn_vectors: (N, D) parameter.
    returns:     (B, N, D) array of dtype images.dtype.
    """
    batch_size = images.shape[0]
    n, d = pgn_vectors.shape
    nd = n * d
    out_dtype = images.dtype

    # Flatten the parameter so the kernel's last dim is lane-dense (N*D >= 128
    # for typical configs; for the demo N*D = 256 = 2 full vreg lanes rows).
    pgn_flat = pgn_vectors.reshape(1, nd)

    # Batch tiling: a single grid step for small/moderate B; otherwise tile in
    # multiples of 8 rows, keeping 2 (double-buffer) x TB x ND x itemsize well
    # under the 32 MiB scoped-VMEM default (v7x-safe).
    max_rows_single_step = 4096
    if batch_size <= max_rows_single_step:
        tb = batch_size          # block == full array dims -> always legal
    else:
        tb = 1024                # multiple of 8; last dim nd handled below

    grid = (pl.cdiv(batch_size, tb),)

    out_flat = pl.pallas_call(
        _iip_kernel,
        out_shape=jax.ShapeDtypeStruct((batch_size, nd), out_dtype),
        grid_spec=pltpu.PrefetchScalarGridSpec(
            num_scalar_prefetch=0,
            grid=grid,
            in_specs=[
                # Parameter pinned at block (0, 0): DMA'd once, VMEM-resident.
                pl.BlockSpec((1, nd), lambda i: (0, 0)),
            ],
            out_specs=pl.BlockSpec((tb, nd), lambda i: (i, 0)),
        ),
        compiler_params=pltpu.CompilerParams(
            dimension_semantics=("parallel",),
        ),
    )(pgn_flat)

    # Free metadata reshape back to (B, N, D).
    return out_flat.reshape(batch_size, n, d)


if __name__ == "__main__":
    key = jax.random.PRNGKey(0)
    k_param, k_img = jax.random.split(key)

    # Module config (small, consistent with __init__):
    nr_output_vectors = 8
    vector_dim = 32

    # Deterministic parameter init: normal_(std=0.02), as in the torch init.
    pgn_vectors = 0.02 * jax.random.normal(
        k_param, (nr_output_vectors, vector_dim), dtype=jnp.float32
    )

    # Example images: NCHW, batch=2, channels=4, spatial=16.
    images = jax.random.normal(k_img, (2, 4, 16, 16), dtype=jnp.float32)

    out = iip_forward(images, pgn_vectors)
    out = jax.block_until_ready(out)

    # Correctness check against the trivially-computed reference.
    ref = jnp.broadcast_to(
        pgn_vectors.astype(images.dtype)[None],
        (images.shape[0], nr_output_vectors, vector_dim),
    )
    assert out.shape == (2, nr_output_vectors, vector_dim)
    assert out.dtype == images.dtype
    assert jnp.array_equal(out, ref)

    print("KERNEL_OK")
</pallas_src>

<mosaic_0001>
module attributes {stable_mosaic.version = 11 : i64} {
  func.func @_iip_kernel(%arg0: i32, %arg1: memref<1x256xf32, #tpu.memory_space<vmem>>, %arg2: memref<2x256xf32, #tpu.memory_space<vmem>>) attributes {dimension_semantics = [#tpu.dimension_semantics<parallel>], iteration_bounds = array<i64: 1>, scalar_prefetch = 0 : i64, scratch_operands = 0 : i64, tpu.core_type = #tpu.core_type<tc>, window_params = [{pipeline_mode = #tpu.pipeline_mode<synchronous>, transform_indices = @transform_0, window_bounds = array<i64: 1, 256>}, {transform_indices = @transform_1, window_bounds = array<i64: 2, 256>}]} {
    %c0 = arith.constant 0 : index
    %c0_0 = arith.constant 0 : index
    %0 = vector.load %arg1[%c0, %c0_0] : memref<1x256xf32, #tpu.memory_space<vmem>>, vector<1x256xf32>
    %1 = vector.shape_cast %0 : vector<1x256xf32> to vector<1x256xf32>
    %2 = vector.broadcast %1 : vector<1x256xf32> to vector<2x256xf32>
    %c0_1 = arith.constant 0 : index
    %c0_2 = arith.constant 0 : index
    %3 = vector.load %arg2[%c0_1, %c0_2] : memref<2x256xf32, #tpu.memory_space<vmem>>, vector<2x256xf32>
    tpu.vector_store %arg2[%c0_1, %c0_2], %2 {strides = array<i32>} : memref<2x256xf32, #tpu.memory_space<vmem>>, vector<2x256xf32>,
    return
  }
  func.func @transform_0(%arg0: i32) -> (i32, i32) {
    %c0_i32 = arith.constant 0 : i32
    %c0_i32_0 = arith.constant 0 : i32
    %c0_i32_1 = arith.constant 0 : i32
    return %c0_i32, %c0_i32_0 : i32, i32
  }
  func.func @transform_1(%arg0: i32) -> (i32, i32) {
    %c0_i32 = arith.constant 0 : i32
    %c0_i32_0 = arith.constant 0 : i32
    return %arg0, %c0_i32 : i32, i32
  }
}

</mosaic_0001>

<bundles_post_ra>
// kernel: tpu_custom_call.1
= control target key start
LH: loop header
LB: loop body
LE: loop exit
PB: predicated region body
PF: predicated region fallthrough
CT: control target
= control target key end

     0   :  { %6 = vsyncpa [#allocation3], 0  ;;  %s143_s0 = inlined_call_operand.hbm [shape: f32[1,256], index: 0, kind: input, shape index: {}]   ;;  %s144_s1 = inlined_call_operand.hbm [shape: f32[2,256], index: 1, kind: output, shape index: {}]  }
   0x1   :  { %7 = vsyncpa [#allocation4], 0  ;;  %s107_s6 = smov [#allocation2]   ;;  %s59_s10 = scalar_lea.hbm %s143_s0, 32 }
   0x2   :  { %s14_s7 = sshll.u32 %s107_s6, 4  ;;  %p60_p0 = scmp.ne.s32.totalorder %s143_s0, %s59_s10  ;;  %s15_s7 = int_to_ptr.vmem [resolvable:$true] %s14_s7 }
   0x3   :  { %p63_p1 = scmp.lt.u32.totalorder %s59_s10, %s143_s0 }
   0x5   :  { %p65_p2 = pnand %p63_p1, %p60_p0 }
   0x7   :  { %68 = shalt.err (!%p65_p2)
}
   0x8   :  { %s69_s15 = scalar_lea.vmem %s15_s7, 32  ;;  %p74_p4 = scmp.lt.s32.totalorder %s15_s7, %s15_s7 }
   0x9   :  { %p70_p3 = scmp.ne.s32.totalorder %s15_s7, %s69_s15  ;;  %p75_p5 = scmp.lt.s32.totalorder %s69_s15, %s69_s15 }
   0xb   :  { %p76_p6 = por %p75_p5, %p74_p4 }
   0xd   :  { %p77_p7 = pnand %p76_p6, %p70_p3 }
   0xf   :  { %80 = shalt.err (!%p77_p7)
}
  0x10   :  { %17 = dma.hbm_to_vmem [thread:$0]  %s143_s0, 32, %s15_s7, [#allocation3]  }
  0x11   :  { %103 = dma.done.wait [#allocation3], 32  }
  0x12   :  { %104 = vsyncadd [#allocation3], 4294967264  ;;  %v23_v0 = vlaneseq  ;;  %v21_v4 = vld [vmem:[#allocation2] sm:$0x3]  ;;  %s108_s18 = smov [#allocation5]  }
  0x13   :  { %s47_s19 = sshll.u32 %s108_s18, 4  ;;  %s48_s19 = int_to_ptr.vmem [resolvable:$true] %s47_s19 }
  0x14   :  { %v24_v1 = vshrl.u32 %v23_v0, 7  ;;  %s81_s20 = scalar_lea.vmem %s48_s19, 64  ;;  %p86_p9 = scmp.lt.s32.totalorder %s48_s19, %s48_s19 }
  0x15   :  { %p82_p8 = scmp.ne.s32.totalorder %s48_s19, %s81_s20  ;;  %p87_p10 = scmp.lt.s32.totalorder %s81_s20, %s81_s20 }
  0x16   :  { %v25_v2 = vsub.s32 0, %v24_v1  ;;  %v29_v3 = vsub.s32 1, %v24_v1 }
  0x17   :  { %p88_p11 = por %p87_p10, %p86_p9 }
  0x18   :  { %v26_v5 = vrot.slane %v21_v4, %v25_v2  ;;  %v30_v6 = vrot.slane %v21_v4, %v29_v3 }
  0x19   :  { %p89_p12 = pnand %p88_p11, %p82_p8 }
  0x1a   :  { %v31_v7 = vcombine.low %v26_v5, %v30_v6 }
  0x1c   :  { %56 = vst.sshfl [vmem:[#allocation5] sm:$0x33 pattern:$0x76325410] %v31_v7 }
  0x1d   :  { %92 = shalt.err (!%p89_p12)
}
  0x1e   :  { %s93_s22 = scalar_lea.hbm %s144_s1, 64 }
  0x1f   :  { %p94_p13 = scmp.ne.s32.totalorder %s144_s1, %s93_s22  ;;  %p97_p0 = scmp.lt.u32.totalorder %s93_s22, %s144_s1 }
  0x21   :  { %p99_p1 = pnand %p97_p0, %p94_p13 }
  0x23   :  { %102 = shalt.err (!%p99_p1)
}
  0x24   :  { %50 = dma.vmem_to_hbm [thread:$0]  %s48_s19, 64, %s144_s1, [#allocation4]  }
  0x25   :  { %105 = dma.done.wait [#allocation4], 64  }
  0x26   :  { %106 = vsyncadd [#allocation4], 4294967232 }
  0x27   :  { %54 = vsyncpa [#allocation3], 1 }
  0x28   :  { %55 = vsyncpa [#allocation4], 1 }

</bundles_post_ra>
